<compile_context>
chip_gen: v7x
topology: tpu7x:2x2x1
jax: 0.10.0
libtpu: 0.0.40
codegen_flags: <defaults>
</compile_context>

<pallas_src>
import functools

import jax
import jax.numpy as jnp
from jax.experimental import pallas as pl
from jax.experimental.pallas import tpu as pltpu


def _bert_embeddings_kernel(
    # scalar-prefetch refs (SMEM)
    tok_ids_sm,          # (N_pad,) int32 — flattened input_ids
    pos_idx_sm,          # (N_pad,) int32 — position index per flattened row
    # regular inputs
    seg_ids_ref,         # (TILE_N, 1) int32 — token_type ids for this tile
    word_hbm,            # (Vw, H) in HBM (pl.ANY) — word embedding table
    pos_hbm,             # (P,  H) in HBM (pl.ANY) — positional embedding table
    seg_tab_ref,         # (Vs, H) VMEM — segment embedding table (tiny)
    gamma_ref,           # (1, H) f32 — LayerNorm weight
    beta_ref,            # (1, H) f32 — LayerNorm bias
    # outputs
    out_ref,             # (TILE_N, H)
    # scratch
    wbuf,                # VMEM (TILE_N, H) — gathered word rows
    pbuf,                # VMEM (TILE_N, H) — gathered positional rows
    sem,                 # DMA semaphores (2,)
    *,
    eps,
):
    tile_n, hidden = out_ref.shape
    base = pl.program_id(0) * tile_n

    # ---- Gather word + positional embedding rows: per-row DMA HBM -> VMEM.
    @pl.loop(0, tile_n)
    def _issue(r):
        tok = tok_ids_sm[base + r]
        pos = pos_idx_sm[base + r]
        pltpu.make_async_copy(word_hbm.at[pl.ds(tok, 1), :],
                              wbuf.at[pl.ds(r, 1), :], sem.at[0]).start()
        pltpu.make_async_copy(pos_hbm.at[pl.ds(pos, 1), :],
                              pbuf.at[pl.ds(r, 1), :], sem.at[1]).start()

    @pl.loop(0, tile_n)
    def _wait(r):
        pltpu.make_async_copy(word_hbm.at[pl.ds(0, 1), :],
                              wbuf.at[pl.ds(r, 1), :], sem.at[0]).wait()
        pltpu.make_async_copy(pos_hbm.at[pl.ds(0, 1), :],
                              pbuf.at[pl.ds(r, 1), :], sem.at[1]).wait()

    # ---- Segment (token-type) embedding: tiny vocab -> VPU select, no MXU.
    seg_ids = seg_ids_ref[...]                          # (TILE_N, 1) int32
    seg_tab = seg_tab_ref[...].astype(jnp.float32)      # (Vs, H)
    vs = seg_tab_ref.shape[0]
    if vs == 2:
        # single vsel per output vreg, broadcast over H
        seg = jnp.where(seg_ids == 1, seg_tab[1:2, :], seg_tab[0:1, :])
    else:
        # general small-V path: masked sum of rows on the VPU
        seg = jnp.zeros((tile_n, hidden), jnp.float32)
        for k in range(vs):
            seg = seg + jnp.where(seg_ids == k, 1.0, 0.0) * seg_tab[k:k + 1, :]

    # ---- Sum + LayerNorm (f32 accumulation), single lane-dense writeback.
    x = wbuf[...].astype(jnp.float32) + pbuf[...].astype(jnp.float32) + seg
    mean = jnp.mean(x, axis=-1, keepdims=True)
    xc = x - mean
    var = jnp.mean(xc * xc, axis=-1, keepdims=True)
    inv = jax.lax.rsqrt(var + eps)
    y = xc * inv * gamma_ref[...] + beta_ref[...]
    # Dropout: identity (eval mode).
    out_ref[...] = y.astype(out_ref.dtype)


def bert_embeddings(input_ids, token_type_ids, position_ids,
                    word_table, pos_table, seg_table,
                    ln_gamma, ln_beta,
                    *, ln_eps=1e-5, tile_n=128, out_dtype=None):
    """Fused BERT embeddings.

    input_ids, token_type_ids: [S, B] int; position_ids: [1, S] int.
    Tables: word [Vw, H], pos [P, H], seg [Vs, H]; ln_gamma/ln_beta: [H].
    Returns [S, B, H].

    tile_n: rows per grid step.  Sweep per chip (see perf notes): keep
    2*(out tile) + wbuf + pbuf + ids well under scoped VMEM (16 MiB v5e,
    32 MiB v6e/v7x default).  out_dtype=bf16 halves the HBM writeback.
    """
    S, B = input_ids.shape
    _, H = word_table.shape
    vs = seg_table.shape[0]
    n = S * B
    out_dtype = word_table.dtype if out_dtype is None else out_dtype

    if position_ids is None:
        position_ids = jnp.arange(S, dtype=jnp.int32)[None, :]
    if token_type_ids is None:
        token_type_ids = jnp.zeros((S, B), jnp.int32)

    # Row tile: multiple of 8 sublanes, no bigger than needed.
    tile_n = max(8, (min(int(tile_n), max(n, 8)) // 8) * 8)
    n_pad = pl.cdiv(n, tile_n) * tile_n
    grid = (n_pad // tile_n,)
    pad = n_pad - n

    # Flattened (row-major [S, B]) per-row gather indices.
    tok_flat = input_ids.reshape(n).astype(jnp.int32)
    seg_flat = token_type_ids.reshape(n).astype(jnp.int32)
    pos_flat = jnp.take(position_ids.reshape(-1).astype(jnp.int32),
                        jnp.arange(n, dtype=jnp.int32) // B)
    if pad:
        zeros = jnp.zeros((pad,), jnp.int32)
        tok_flat = jnp.concatenate([tok_flat, zeros])
        seg_flat = jnp.concatenate([seg_flat, zeros])
        pos_flat = jnp.concatenate([pos_flat, zeros])

    seg_ids_2d = seg_flat.reshape(n_pad, 1)
    gamma2d = ln_gamma.reshape(1, H).astype(jnp.float32)
    beta2d = ln_beta.reshape(1, H).astype(jnp.float32)

    kernel = functools.partial(_bert_embeddings_kernel, eps=float(ln_eps))

    out_flat = pl.pallas_call(
        kernel,
        out_shape=jax.ShapeDtypeStruct((n_pad, H), out_dtype),
        grid_spec=pltpu.PrefetchScalarGridSpec(
            num_scalar_prefetch=2,
            grid=grid,
            in_specs=[
                # token-type ids for this row tile (small, lane-padded once tiled)
                pl.BlockSpec((tile_n, 1), lambda i, *_: (i, 0)),
                # large tables stay in HBM; rows DMA-gathered in-kernel
                pl.BlockSpec(memory_space=pl.ANY),
                pl.BlockSpec(memory_space=pl.ANY),
                # tiny segment table + LN params: VMEM-resident across the grid
                pl.BlockSpec((vs, H), lambda i, *_: (0, 0)),
                pl.BlockSpec((1, H), lambda i, *_: (0, 0)),
                pl.BlockSpec((1, H), lambda i, *_: (0, 0)),
            ],
            out_specs=pl.BlockSpec((tile_n, H), lambda i, *_: (i, 0)),
            scratch_shapes=[
                pltpu.VMEM((tile_n, H), word_table.dtype),
                pltpu.VMEM((tile_n, H), pos_table.dtype),
                pltpu.SemaphoreType.DMA((2,)),
            ],
        ),
        compiler_params=pltpu.CompilerParams(
            dimension_semantics=("parallel",)),
    )(tok_flat, pos_flat, seg_ids_2d, word_table, pos_table, seg_table,
      gamma2d, beta2d)

    return out_flat[:n].reshape(S, B, H)


if __name__ == "__main__":
    # Small deterministic problem consistent with BertEmbeddings.forward().
    vocab_size = 100
    max_position_embeddings = 64
    type_vocab_size = 2
    hidden_size = 32
    seq_len = 8
    batch = 2
    initializer_range = 0.02
    ln_eps = 1e-5

    key = jax.random.PRNGKey(0)
    k1, k2, k3, k4, k5, k6, k7 = jax.random.split(key, 7)

    word_table = initializer_range * jax.random.normal(
        k1, (vocab_size, hidden_size), dtype=jnp.float32)
    pos_table = initializer_range * jax.random.normal(
        k2, (max_position_embeddings, hidden_size), dtype=jnp.float32)
    seg_table = initializer_range * jax.random.normal(
        k3, (type_vocab_size, hidden_size), dtype=jnp.float32)
    # LayerNorm affine (perturbed from the default 1/0 to make the check stronger)
    ln_gamma = 1.0 + 0.1 * jax.random.normal(k6, (hidden_size,), dtype=jnp.float32)
    ln_beta = 0.1 * jax.random.normal(k7, (hidden_size,), dtype=jnp.float32)

    input_ids = jax.random.randint(
        k4, (seq_len, batch), minval=0, maxval=vocab_size, dtype=jnp.int32)
    token_type_ids = jax.random.randint(
        k5, (seq_len, batch), minval=0, maxval=type_vocab_size, dtype=jnp.int32)
    position_ids = jnp.arange(seq_len, dtype=jnp.int32)[None, :]

    out = bert_embeddings(input_ids, token_type_ids, position_ids,
                          word_table, pos_table, seg_table,
                          ln_gamma, ln_beta, ln_eps=ln_eps, tile_n=8)
    out = jax.block_until_ready(out)

    # Pure-JAX reference (matches the PyTorch forward in eval mode).
    tok_e = jnp.take(word_table, input_ids, axis=0)                     # (S,B,H)
    pos_e = jnp.take(pos_table, position_ids[0], axis=0)[:, None, :]    # (S,1,H)
    seg_e = jnp.take(seg_table, token_type_ids, axis=0)                 # (S,B,H)
    x = tok_e + pos_e + seg_e
    mean = x.mean(-1, keepdims=True)
    var = ((x - mean) ** 2).mean(-1, keepdims=True)
    ref = (x - mean) / jnp.sqrt(var + ln_eps) * ln_gamma + ln_beta

    assert out.shape == (seq_len, batch, hidden_size), out.shape
    assert jnp.allclose(out, ref, atol=1e-4, rtol=1e-4), "mismatch vs reference"

    print("KERNEL_OK")
</pallas_src>

<mosaic_0001>
module attributes {stable_mosaic.version = 11 : i64} {
  func.func @_bert_embeddings_kernel(%arg0: i32, %arg1: memref<16xi32, #tpu.memory_space<smem>>, %arg2: memref<16xi32, #tpu.memory_space<smem>>, %arg3: memref<8x1xi32, #tpu.memory_space<vmem>>, %arg4: memref<100x32xf32, #tpu.memory_space<any>>, %arg5: memref<64x32xf32, #tpu.memory_space<any>>, %arg6: memref<2x32xf32, #tpu.memory_space<vmem>>, %arg7: memref<1x32xf32, #tpu.memory_space<vmem>>, %arg8: memref<1x32xf32, #tpu.memory_space<vmem>>, %arg9: memref<8x32xf32, #tpu.memory_space<vmem>>, %arg10: memref<8x32xf32, #tpu.memory_space<vmem>>, %arg11: memref<8x32xf32, #tpu.memory_space<vmem>>, %arg12: memref<2x!tpu.dma_semaphore, #tpu.memory_space<semaphore_mem>>) attributes {dimension_semantics = [#tpu.dimension_semantics<parallel>], iteration_bounds = array<i64: 2>, scalar_prefetch = 2 : i64, scratch_operands = 3 : i64, tpu.core_type = #tpu.core_type<tc>, window_params = [{transform_indices = @transform_0, window_bounds = array<i64: 8, 1>}, {}, {}, {pipeline_mode = #tpu.pipeline_mode<synchronous>, transform_indices = @transform_3, window_bounds = array<i64: 2, 32>}, {pipeline_mode = #tpu.pipeline_mode<synchronous>, transform_indices = @transform_4, window_bounds = array<i64: 1, 32>}, {pipeline_mode = #tpu.pipeline_mode<synchronous>, transform_indices = @transform_5, window_bounds = array<i64: 1, 32>}, {transform_indices = @transform_6, window_bounds = array<i64: 8, 32>}]} {
    %c8_i32 = arith.constant 8 : i32
    %0 = arith.muli %arg0, %c8_i32 : i32
    %c0_i32 = arith.constant 0 : i32
    %c8_i32_0 = arith.constant 8 : i32
    %1 = arith.addi %c0_i32, %c8_i32_0 : i32
    %c1_i32 = arith.constant 1 : i32
    scf.for %arg13 = %c0_i32 to %1 step %c1_i32  : i32 {
      %c1_i32_24 = arith.constant 1 : i32
      %43 = arith.muli %arg13, %c1_i32_24 : i32
      %c0_i32_25 = arith.constant 0 : i32
      %44 = arith.addi %c0_i32_25, %43 : i32
      %45 = arith.addi %0, %44 : i32
      %46 = arith.index_cast %45 : i32 to index
      %47 = memref.load %arg1[%46] : memref<16xi32, #tpu.memory_space<smem>>
      %48 = arith.addi %0, %44 : i32
      %49 = arith.index_cast %48 : i32 to index
      %50 = memref.load %arg2[%49] : memref<16xi32, #tpu.memory_space<smem>>
      %c0_i32_26 = arith.constant 0 : i32
      %c0_i32_27 = arith.constant 0 : i32
      %51 = tpu.memref_slice %arg4[%47, %c0_i32_27] : memref<100x32xf32, #tpu.memory_space<any>> -> memref<1x32xf32, #tpu.memory_space<any>>
      %c0_i32_28 = arith.constant 0 : i32
      %52 = tpu.memref_slice %arg10[%44, %c0_i32_28] : memref<8x32xf32, #tpu.memory_space<vmem>> -> memref<1x32xf32, #tpu.memory_space<vmem>>
      %53 = tpu.memref_slice %arg12[%c0_i32_26] : memref<2x!tpu.dma_semaphore, #tpu.memory_space<semaphore_mem>> -> memref<1x!tpu.dma_semaphore, #tpu.memory_space<semaphore_mem>>
      %54 = tpu.memref_squeeze %53 : memref<1x!tpu.dma_semaphore, #tpu.memory_space<semaphore_mem>> -> memref<!tpu.dma_semaphore, #tpu.memory_space<semaphore_mem>>
      tpu.enqueue_dma source(%51 : memref<1x32xf32, #tpu.memory_space<any>>) target(%52 : memref<1x32xf32, #tpu.memory_space<vmem>>) target_semaphore(%54 : memref<!tpu.dma_semaphore, #tpu.memory_space<semaphore_mem>>)
      %c1_i32_29 = arith.constant 1 : i32
      %c0_i32_30 = arith.constant 0 : i32
      %55 = tpu.memref_slice %arg5[%50, %c0_i32_30] : memref<64x32xf32, #tpu.memory_space<any>> -> memref<1x32xf32, #tpu.memory_space<any>>
      %c0_i32_31 = arith.constant 0 : i32
      %56 = tpu.memref_slice %arg11[%44, %c0_i32_31] : memref<8x32xf32, #tpu.memory_space<vmem>> -> memref<1x32xf32, #tpu.memory_space<vmem>>
      %57 = tpu.memref_slice %arg12[%c1_i32_29] : memref<2x!tpu.dma_semaphore, #tpu.memory_space<semaphore_mem>> -> memref<1x!tpu.dma_semaphore, #tpu.memory_space<semaphore_mem>>
      %58 = tpu.memref_squeeze %57 : memref<1x!tpu.dma_semaphore, #tpu.memory_space<semaphore_mem>> -> memref<!tpu.dma_semaphore, #tpu.memory_space<semaphore_mem>>
      tpu.enqueue_dma source(%55 : memref<1x32xf32, #tpu.memory_space<any>>) target(%56 : memref<1x32xf32, #tpu.memory_space<vmem>>) target_semaphore(%58 : memref<!tpu.dma_semaphore, #tpu.memory_space<semaphore_mem>>)
    }
    %c8_i32_1 = arith.constant 8 : i32
    %c0_i32_2 = arith.constant 0 : i32
    %c8_i32_3 = arith.constant 8 : i32
    %2 = arith.addi %c0_i32_2, %c8_i32_3 : i32
    %c1_i32_4 = arith.constant 1 : i32
    scf.for %arg13 = %c0_i32_2 to %2 step %c1_i32_4  : i32 {
      %c1_i32_24 = arith.constant 1 : i32
      %43 = arith.muli %arg13, %c1_i32_24 : i32
      %c0_i32_25 = arith.constant 0 : i32
      %44 = arith.addi %c0_i32_25, %43 : i32
      %c0_i32_26 = arith.constant 0 : i32
      %c0_i32_27 = arith.constant 0 : i32
      %c0_i32_28 = arith.constant 0 : i32
      %45 = tpu.memref_slice %arg4[%c0_i32_27, %c0_i32_28] : memref<100x32xf32, #tpu.memory_space<any>> -> memref<1x32xf32, #tpu.memory_space<any>>
      %c0_i32_29 = arith.constant 0 : i32
      %46 = tpu.memref_slice %arg10[%44, %c0_i32_29] : memref<8x32xf32, #tpu.memory_space<vmem>> -> memref<1x32xf32, #tpu.memory_space<vmem>>
      %47 = tpu.memref_slice %arg12[%c0_i32_26] : memref<2x!tpu.dma_semaphore, #tpu.memory_space<semaphore_mem>> -> memref<1x!tpu.dma_semaphore, #tpu.memory_space<semaphore_mem>>
      %48 = tpu.memref_squeeze %47 : memref<1x!tpu.dma_semaphore, #tpu.memory_space<semaphore_mem>> -> memref<!tpu.dma_semaphore, #tpu.memory_space<semaphore_mem>>
      tpu.wait_dma2 semaphore(%48 : memref<!tpu.dma_semaphore, #tpu.memory_space<semaphore_mem>>) src(%45 : memref<1x32xf32, #tpu.memory_space<any>>) dst(%46 : memref<1x32xf32, #tpu.memory_space<vmem>>)
      %c1_i32_30 = arith.constant 1 : i32
      %c0_i32_31 = arith.constant 0 : i32
      %c0_i32_32 = arith.constant 0 : i32
      %49 = tpu.memref_slice %arg5[%c0_i32_31, %c0_i32_32] : memref<64x32xf32, #tpu.memory_space<any>> -> memref<1x32xf32, #tpu.memory_space<any>>
      %c0_i32_33 = arith.constant 0 : i32
      %50 = tpu.memref_slice %arg11[%44, %c0_i32_33] : memref<8x32xf32, #tpu.memory_space<vmem>> -> memref<1x32xf32, #tpu.memory_space<vmem>>
      %51 = tpu.memref_slice %arg12[%c1_i32_30] : memref<2x!tpu.dma_semaphore, #tpu.memory_space<semaphore_mem>> -> memref<1x!tpu.dma_semaphore, #tpu.memory_space<semaphore_mem>>
      %52 = tpu.memref_squeeze %51 : memref<1x!tpu.dma_semaphore, #tpu.memory_space<semaphore_mem>> -> memref<!tpu.dma_semaphore, #tpu.memory_space<semaphore_mem>>
      tpu.wait_dma2 semaphore(%52 : memref<!tpu.dma_semaphore, #tpu.memory_space<semaphore_mem>>) src(%49 : memref<1x32xf32, #tpu.memory_space<any>>) dst(%50 : memref<1x32xf32, #tpu.memory_space<vmem>>)
    }
    %c8_i32_5 = arith.constant 8 : i32
    %c0 = arith.constant 0 : index
    %c0_6 = arith.constant 0 : index
    %3 = vector.load %arg3[%c0, %c0_6] : memref<8x1xi32, #tpu.memory_space<vmem>>, vector<8x1xi32>
    %c0_7 = arith.constant 0 : index
    %c0_8 = arith.constant 0 : index
    %4 = vector.load %arg6[%c0_7, %c0_8] : memref<2x32xf32, #tpu.memory_space<vmem>>, vector<2x32xf32>
    %c1_i32_9 = arith.constant 1 : i32
    %5 = vector.broadcast %c1_i32_9 : i32 to vector<8x1xi32>
    %6 = arith.cmpi eq, %3, %5 : vector<8x1xi32>
    %7 = vector.extract_strided_slice %4 {offsets = [1, 0], sizes = [1, 32], strides = [1, 1]} : vector<2x32xf32> to vector<1x32xf32>
    %8 = vector.extract_strided_slice %4 {offsets = [0, 0], sizes = [1, 32], strides = [1, 1]} : vector<2x32xf32> to vector<1x32xf32>
    %9 = vector.shape_cast %6 : vector<8x1xi1> to vector<8x1xi1>
    %10 = vector.broadcast %9 : vector<8x1xi1> to vector<8x32xi1>
    %11 = vector.shape_cast %7 : vector<1x32xf32> to vector<1x32xf32>
    %12 = vector.broadcast %11 : vector<1x32xf32> to vector<8x32xf32>
    %13 = vector.shape_cast %8 : vector<1x32xf32> to vector<1x32xf32>
    %14 = vector.broadcast %13 : vector<1x32xf32> to vector<8x32xf32>
    %15 = arith.select %10, %12, %14 : vector<8x32xi1>, vector<8x32xf32>
    %c0_10 = arith.constant 0 : index
    %c0_11 = arith.constant 0 : index
    %16 = vector.load %arg10[%c0_10, %c0_11] : memref<8x32xf32, #tpu.memory_space<vmem>>, vector<8x32xf32>
    %c0_12 = arith.constant 0 : index
    %c0_13 = arith.constant 0 : index
    %17 = vector.load %arg11[%c0_12, %c0_13] : memref<8x32xf32, #tpu.memory_space<vmem>>, vector<8x32xf32>
    %18 = arith.addf %16, %17 : vector<8x32xf32>
    %19 = arith.addf %18, %15 : vector<8x32xf32>
    %cst = arith.constant dense<0.000000e+00> : vector<8xf32>
    %20 = vector.multi_reduction <add>, %19, %cst [1] : vector<8x32xf32> to vector<8xf32>
    %21 = vector.shape_cast %20 : vector<8xf32> to vector<8x1xf32>
    %cst_14 = arith.constant 3.200000e+01 : f32
    %22 = vector.broadcast %cst_14 : f32 to vector<8x1xf32>
    %23 = arith.divf %21, %22 : vector<8x1xf32>
    %24 = vector.broadcast %23 : vector<8x1xf32> to vector<8x32xf32>
    %25 = arith.subf %19, %24 : vector<8x32xf32>
    %26 = arith.mulf %25, %25 : vector<8x32xf32>
    %cst_15 = arith.constant dense<0.000000e+00> : vector<8xf32>
    %27 = vector.multi_reduction <add>, %26, %cst_15 [1] : vector<8x32xf32> to vector<8xf32>
    %28 = vector.shape_cast %27 : vector<8xf32> to vector<8x1xf32>
    %cst_16 = arith.constant 3.200000e+01 : f32
    %29 = vector.broadcast %cst_16 : f32 to vector<8x1xf32>
    %30 = arith.divf %28, %29 : vector<8x1xf32>
    %cst_17 = arith.constant 9.99999974E-6 : f32
    %31 = vector.broadcast %cst_17 : f32 to vector<8x1xf32>
    %32 = arith.addf %30, %31 : vector<8x1xf32>
    %33 = math.rsqrt %32 : vector<8x1xf32>
    %34 = vector.broadcast %33 : vector<8x1xf32> to vector<8x32xf32>
    %35 = arith.mulf %25, %34 : vector<8x32xf32>
    %c0_18 = arith.constant 0 : index
    %c0_19 = arith.constant 0 : index
    %36 = vector.load %arg7[%c0_18, %c0_19] : memref<1x32xf32, #tpu.memory_space<vmem>>, vector<1x32xf32>
    %37 = vector.broadcast %36 : vector<1x32xf32> to vector<8x32xf32>
    %38 = arith.mulf %35, %37 : vector<8x32xf32>
    %c0_20 = arith.constant 0 : index
    %c0_21 = arith.constant 0 : index
    %39 = vector.load %arg8[%c0_20, %c0_21] : memref<1x32xf32, #tpu.memory_space<vmem>>, vector<1x32xf32>
    %40 = vector.broadcast %39 : vector<1x32xf32> to vector<8x32xf32>
    %41 = arith.addf %38, %40 : vector<8x32xf32>
    %c0_22 = arith.constant 0 : index
    %c0_23 = arith.constant 0 : index
    %42 = vector.load %arg9[%c0_22, %c0_23] : memref<8x32xf32, #tpu.memory_space<vmem>>, vector<8x32xf32>
    tpu.vector_store %arg9[%c0_22, %c0_23], %41 {strides = array<i32>} : memref<8x32xf32, #tpu.memory_space<vmem>>, vector<8x32xf32>,
    return
  }
  func.func @transform_0(%arg0: i32, %arg1: memref<16xi32, #tpu.memory_space<smem>>, %arg2: memref<16xi32, #tpu.memory_space<smem>>) -> (i32, i32) {
    %c0_i32 = arith.constant 0 : i32
    %c0_i32_0 = arith.constant 0 : i32
    return %arg0, %c0_i32 : i32, i32
  }
  func.func @transform_3(%arg0: i32, %arg1: memref<16xi32, #tpu.memory_space<smem>>, %arg2: memref<16xi32, #tpu.memory_space<smem>>) -> (i32, i32) {
    %c0_i32 = arith.constant 0 : i32
    %c0_i32_0 = arith.constant 0 : i32
    %c0_i32_1 = arith.constant 0 : i32
    return %c0_i32, %c0_i32_0 : i32, i32
  }
  func.func @transform_4(%arg0: i32, %arg1: memref<16xi32, #tpu.memory_space<smem>>, %arg2: memref<16xi32, #tpu.memory_space<smem>>) -> (i32, i32) {
    %c0_i32 = arith.constant 0 : i32
    %c0_i32_0 = arith.constant 0 : i32
    %c0_i32_1 = arith.constant 0 : i32
    return %c0_i32, %c0_i32_0 : i32, i32
  }
  func.func @transform_5(%arg0: i32, %arg1: memref<16xi32, #tpu.memory_space<smem>>, %arg2: memref<16xi32, #tpu.memory_space<smem>>) -> (i32, i32) {
    %c0_i32 = arith.constant 0 : i32
    %c0_i32_0 = arith.constant 0 : i32
    %c0_i32_1 = arith.constant 0 : i32
    return %c0_i32, %c0_i32_0 : i32, i32
  }
  func.func @transform_6(%arg0: i32, %arg1: memref<16xi32, #tpu.memory_space<smem>>, %arg2: memref<16xi32, #tpu.memory_space<smem>>) -> (i32, i32) {
    %c0_i32 = arith.constant 0 : i32
    %c0_i32_0 = arith.constant 0 : i32
    return %arg0, %c0_i32 : i32, i32
  }
}

</mosaic_0001>

<bundles_post_ra>
// kernel: tpu_custom_call.1
= control target key start
LH: loop header
LB: loop body
LE: loop exit
PB: predicated region body
PF: predicated region fallthrough
CT: control target
= control target key end

     0   :  { %s869_s0 = inlined_call_operand.vmem [shape: s32[16], index: 0, kind: input, shape index: {}]   ;;  %s870_s2 = inlined_call_operand.vmem [shape: s32[16,1], index: 2, kind: input, shape index: {}]   ;;  %s871_s3 = inlined_call_operand.vmem [shape: f32[100,32], index: 3, kind: input, shape index: {}]   ;;  %s872_s4 = inlined_call_operand.vmem [shape: f32[64,32], index: 4, kind: input, shape index: {}]   ;;  %s873_s5 = inlined_call_operand.vmem [shape: f32[2,32], index: 5, kind: input, shape index: {}]   ;;  %s874_s6 = inlined_call_operand.vmem [shape: f32[1,32], index: 6, kind: input, shape index: {}]   ;;  %s875_s7 = inlined_call_operand.vmem [shape: f32[1,32], index: 7, kind: input, shape index: {}]   ;;  %s876_s8 = inlined_call_operand.hbm [shape: f32[16,32], index: 8, kind: output, shape index: {}]   ;;  %s877_s1 = inlined_call_operand.vmem [shape: s32[16], index: 1, kind: input, shape index: {}]  }
   0x1   :  { %s13_s29 = sshll.u32 %s869_s0, 4  ;;  %s17_s10 = sshll.u32 %s877_s1, 4  ;;  %s14_s29 = int_to_ptr.vmem [resolvable:$true] %s13_s29  ;;  %s18_s10 = int_to_ptr.vmem [resolvable:$true] %s17_s10 }
   0x2   :  { %s571_s11 = scalar_lea.vmem %s14_s29, 16  ;;  %p576_p1 = scmp.lt.s32.totalorder %s14_s29, %s14_s29 }
   0x3   :  { %p572_p0 = scmp.ne.s32.totalorder %s14_s29, %s571_s11  ;;  %p577_p2 = scmp.lt.s32.totalorder %s571_s11, %s571_s11 }
   0x5   :  { %p578_p3 = por %p577_p2, %p576_p1 }
   0x7   :  { %p579_p4 = pnand %p578_p3, %p572_p0 }
   0x9   :  { %582 = shalt.err (!%p579_p4)  }
   0xa   :  { %s681_s12 = smov [#allocation6]   ;;  %s583_s13 = scalar_lea.vmem %s18_s10, 16 }
   0xb   :  { %16 = dma.vmem_to_smem %s14_s29, 16, %s681_s12, [#allocation5] }
   0xc   :  { %p584_p5 = scmp.ne.s32.totalorder %s18_s10, %s583_s13  ;;  %p588_p6 = scmp.lt.s32.totalorder %s18_s10, %s18_s10 }
   0xd   :  { %p589_p7 = scmp.lt.s32.totalorder %s583_s13, %s583_s13 }
   0xf   :  { %p590_p8 = por %p589_p7, %p588_p6 }
  0x11   :  { %p591_p9 = pnand %p590_p8, %p584_p5 }
  0x13   :  { %594 = shalt.err (!%p591_p9)  }
  0x14   :  { %s682_s0 = smov [#allocation7]  }
  0x15   :  { %20 = dma.vmem_to_smem %s18_s10, 16, %s682_s0, [#allocation5] }
  0x16   :  { %647 = dma.done.wait [#allocation5], 32 }
  0x17   :  { %648 = vsyncadd [#allocation5], 4294967264 }
  0x18   :  { %22 = sfence }
  0x19   :  { %23 = vsyncpa [#allocation9], 0 }
  0x1a   :  { %25 = vsyncpa [#allocation9 + $0x1], 0  ;;  %s736_s1 = smov 0   ;;  %s738_s14 = smov 0  }
  0x1b   :  { %s740_s15 = smov 0   ;;  %s742_s16 = smov 0  }
  0x1c LB: > { %s757_s17 = sadd.s32 4294967295, %s671_s16   ;;  %s495_s18 = sadd.s32 4294967294, %s671_s16   ;;  %s671_s16 = sphi %s742_s16, %s887_s16   ;;  %s667_s15 = sphi %s740_s15, %s886_s15   ;;  %s663_s14 = sphi %s738_s14, %s885_s14   ;;  %s659_s1 = sphi %s736_s1, %s884_s1  }
  0x1d   : > { %s761_s19 = sadd.s32 1, %s671_s16   ;;  %s127_s20 = sadd.s32 1, %s667_s15 }
  0x1e   : > { %s124_s21 = ssub.s32 %s671_s16, %s761_s19  ;;  %p137_p10 = scmp.ne.s32.totalorder %s667_s15, %s663_s14 }
  0x1f   : > { %p125_p11 = scmp.eq.s32.totalorder %s124_s21, 0  ;;  %p138_p12 = scmp.eq.s32.totalorder %s757_s17, 1 }
  0x20   : > { %p143_p13 = scmp.ne.s32.totalorder %s663_s14, %s659_s1  ;;  %p144_p0 = scmp.eq.s32.totalorder %s495_s18, 1 }
  0x21   : > { %s772_s22 = scalar_select %p125_p11, %s667_s15, %s127_s20  }
  0x22   : > { %p774_p1 = por %p138_p12, %p137_p10  ;;  %p778_p2 = por %p144_p0, %p143_p13 }
  0x23   : > { %879 = sst [smem:[#allocation16_spill]] %s772_s22  ;;  %p498_p3 = scmp.ge.s32.totalorder %s671_s16, 1 }
  0x24   : > { %p178_p4 = scmp.lt.s32.totalorder %s671_s16, 3 }
  0x26   : > { %p179_p5 = pnand %p498_p3, %p178_p4 }
  0x27   : > { %s878_s25 = sand.u32 (!%p179_p5), 1, %s663_s14   ;;  %p203_p6 = scmp.lt.s32.totalorder (!%p179_p5), %s757_s17, 1 }
  0x28   : > { %182 = sbr.rel (%p179_p5) target bundleno = 541 (0x21d), region = 36  ;;  %s788_s26 = sshll.u32 (!%p179_p5), %s878_s25, 3 }
  0x29   : > { %s501_s27 = sshll.u32 (!%p179_p5), %s757_s17, 3  ;;  %s202_s11 = scalar_lea.vmem (!%p179_p5), [#allocation8], %s788_s26 }
  0x2a   : > { %s673_s12 = smov (!%p179_p5), 0  }
  0x2f   : > { %s204_s28 = scalar_select %p203_p6, %s757_s17, 1 }
  0x31   : > { %s500_s29 = sshll.u32 %s204_s28, 3 }
  0x32   : > { %s795_s10 = scalar_lea.vmem %s870_s2, %s500_s29 }
  0x33 LB: >> { %s214_s13 = sadd.s32 %s675_s12, %s501_s27  ;;  %s218_s22 = scalar_lea.vmem [#allocation2], %s675_s12  ;;  %s675_s12 = sphi %s673_s12, %s213_s12  }
  0x34   : >> { %s215_s0 = sld [smem:[#allocation6 + %s214_s13]] }
  0x35   : >> { %s216_s18 = sld [smem:[#allocation7 + %s214_s13]] }
  0x3a   : >> { %s217_s25 = scalar_lea.vmem %s871_s3, %s215_s0 }
  0x3b   : >> { %v236_v0 = vld [vmem:[%s217_s25] sm:$0x1] }
  0x3c   : >> { %237 = vst [vmem:[%s218_s22] sm:$0x1] %v236_v0 }
  0x3d   : >> { %262 = vsyncadd [#allocation4], 16  ;;  %s263_s29 = scalar_lea.vmem %s872_s4, %s216_s18  ;;  %s264_s9 = scalar_lea.vmem [#allocation3], %s675_s12 }
  0x3e   : >> { %v283_v1 = vld [vmem:[%s263_s29] sm:$0x1] }
  0x3f   : >> { %284 = vst [vmem:[%s264_s9] sm:$0x1] %v283_v1 }
  0x40   : >> { %309 = vsyncadd [#allocation4 + $0x1], 16  ;;  %s213_s12 = sadd.s32 1, %s675_s12  }
  0x41   : >> { %p210_p7 = scmp.ge.s32.totalorder %s213_s12, 8  }
  0x42   : > { %s677_s13 = smov (%p210_p7), 0  }
  0x43   : > { %212 = sbr.rel (!%p210_p7) target bundleno = 51 (0x33), region = 172 }
  0x4a LB: >> { %649 = dma.done.wait [#allocation4], 16  ;;  %s679_s13 = sphi %s677_s13, %s315_s13  }
  0x4b   : >> { %650 = vsyncadd [#allocation4], 4294967280 }
  0x4c   : >> { %651 = dma.done.wait [#allocation4 + $0x1], 16 }
  0x4d   : >> { %652 = vsyncadd [#allocation4 + $0x1], 4294967280  ;;  %s315_s13 = sadd.s32 1, %s679_s13  }
  0x4e   : >> { %p312_p8 = scmp.ge.s32.totalorder %s315_s13, 8  }
  0x4f   : > { %v322_v2 = vld [vmem:[%s795_s10] sm:$0xff] (%p312_p8)  ;;  %v683_v3 = vmov (%p312_p8), 0   ;;  %v330_v5 = vlaneseq (%p312_p8)  ;;  %v340_v11 = vld [vmem:[#allocation3] sm:$0xff] (%p312_p8)  ;;  %vm343_vm2 = vcmask (%p312_p8), 261120   ;;  %s505_s18 = sshll.u32 (%p312_p8), %s757_s17, 7  ;;  %s389_s20 = sshll.u32 (%p312_p8), %s202_s11, 4  ;;  %s824_s20 = int_to_ptr.vmem [resolvable:$true] %s389_s20 }
  0x50   : > { %314 = sbr.rel (!%p312_p8) target bundleno = 74 (0x4a), region = 183  ;;  %568 = vset.pattern.permute.xlu0 (%p312_p8), %v683_v3  ;;  %vm324_vm0 = vcmp.eq.s32.totalorder (%p312_p8), %v322_v2, 1  ;;  %v323_v9 = vld [vmem:[%s873_s5] sm:$0x3] (%p312_p8)  ;;  %s822_s30 = scalar_lea.hbm (%p312_p8), %s876_s8, %s505_s18 }
  0x51   : > { %v325_v4 = vsel (%p312_p8), %vm324_vm0, 1, %v683_v3  ;;  %v331_v6 = vshrl.u32 (%p312_p8), %v330_v5, 7  ;;  %v339_v10 = vld [vmem:[#allocation2] sm:$0xff] (%p312_p8)  ;;  %s882_s29 = sand.u32 (%p312_p8), 1, %s663_s14   ;;  %s595_s17 = scalar_lea.vmem (%p312_p8), %s824_s20, 128 }
  0x52   : > { %327 = vperm.xlu0 (%p312_p8), %568, %v325_v4   ;;  %v341_v14 = vadd.f32 (%p312_p8), %v340_v11, %v339_v10  ;;  %v502_v28 = vld [vmem:[%s874_s6] ss:$0 sm:$0xff] (%p312_p8)  ;;  %s376_s9 = scalar_lea.sflag (%p312_p8), [#allocation9], %s882_s29  ;;  %p596_p9 = scmp.ne.s32.totalorder (%p312_p8), %s824_s20, %s595_s17 }
  0x53   : > { %v332_v7 = vsub.s32 (%p312_p8), 1, %v331_v6  ;;  %v336_v8 = vsub.s32 (%p312_p8), 0, %v331_v6  ;;  %v503_v30 = vld [vmem:[%s875_s7] ss:$0 sm:$0xff] (%p312_p8)  ;;  %s684_s13 = smov (%p312_p8), [#allocation8]  }
  0x54   : > { %p597_p10 = pnand (%p312_p8), %p596_p9, %p774_p1  ;;  %s599_s22 = sshll.u32 (%p312_p8), %s684_s13, 4  ;;  %s600_s22 = int_to_ptr.vmem [resolvable:$false] %s599_s22 }
  0x55   : > { %v333_v12 = vrot.slane (%p312_p8), %v323_v9, %v332_v7  ;;  %v337_v13 = vrot.slane (%p312_p8), %v323_v9, %v336_v8  ;;  %s601_s25 = scalar_lea.vmem (%p312_p8), %s600_s22, 256  ;;  %p602_p12 = scmp.lt.s32.totalorder (%p312_p8), %s824_s20, %s600_s22 }
  0x56   : > { %p598_p11 = pneg (%p312_p8), %p597_p10  ;;  %p603_p13 = scmp.lt.s32.totalorder (%p312_p8), %s601_s25, %s595_s17 }
  0x58   : > { %p604_p0 = por %p603_p13, %p602_p12 }
  0x5a   : > { %p605_p3 = pnand %p604_p0, %p598_p11 }
  0xd1   : > { %v328_v15 = vpop.permute.xlu0 %327 }
  0xd2   : > { %vm329_vm1 = vcmp.eq.s32.totalorder %v328_v15, 1 }
  0xd3   : > { %v338_v16 = vsel %vm329_vm1, %v333_v12, %v337_v13 }
  0xd4   : > { %v342_v17 = vadd.f32 %v341_v14, %v338_v16 }
  0xd6   : > { %v344_v18 = vsel %vm343_vm2, %v342_v17, 0.0 }
  0xd7   : > { %345 = vadd.xlane.f32.xlu0 %v344_v18 }
 0x164   : > { %v346_v19 = vpop.xlane.xlu0 %345 }
 0x165   : > { %v348_v20 = vmul.f32 0.03125, %v346_v19 }
 0x167   : > { %v349_v21 = vsub.f32 %v342_v17, %v348_v20 }
 0x169   : > { %v350_v22 = vmul.f32 %v349_v21, %v349_v21 }
 0x16b   : > { %v351_v23 = vsel %vm343_vm2, %v350_v22, 0.0 }
 0x16c   : > { %352 = vadd.xlane.f32.xlu1 %v351_v23 }
 0x1f9   : > { %v353_v24 = vpop.xlane.xlu1 %352 }
 0x1fa   : > { %v354_v25 = vmul.f32 0.03125, %v353_v24 }
 0x1fc   : > { %v355_v26 = vadd.f32 1e-05, %v354_v25 }
 0x1fe   : > { %569 = vrsqrt.f32 %v355_v26 }
 0x208   : > { %v570_v27 = vpop.eup %569 }
 0x209   : > { %v357_v29 = vmul.f32 %v570_v27, %v349_v21 }
 0x20b   : > { %v365_v31 = vmul.f32 %v502_v28, %v357_v29 }
 0x20d   : > { %v373_v32 = vadd.f32 %v503_v30, %v365_v31 }
 0x20f   : > { %374 = vst.msk [vmem:[%s202_s11] sm:$0xff] %vm343_vm2, %v373_v32 }
 0x210   : > { %608 = shalt.err (!%p605_p3)
}
 0x211   : > { %s609_s26 = scalar_lea.hbm %s822_s30, 128  ;;  %s613_s10 = scalar_lea.hbm %s876_s8, 256 }
 0x212   : > { %p610_p4 = scmp.ne.s32.totalorder %s822_s30, %s609_s26  ;;  %p614_p7 = scmp.lt.u32.totalorder %s822_s30, %s876_s8 }
 0x213   : > { %p615_p8 = scmp.lt.u32.totalorder %s613_s10, %s609_s26  ;;  %p617_p10 = scmp.lt.u32.totalorder %s609_s26, %s822_s30 }
 0x214   : > { %p611_p5 = pnand %p610_p4, %p774_p1 }
 0x215   : > { %p616_p9 = por %p615_p8, %p614_p7 }
 0x216   : > { %p612_p6 = pneg %p611_p5 }
 0x217   : > { %p618_p11 = por %p617_p10, %p616_p9 }
 0x219   : > { %p619_p12 = pnand %p618_p11, %p612_p6 }
 0x21b   : > { %622 = shalt.err (!%p619_p12)
}
 0x21c   : > { %510 = dma.vmem_to_hbm [thread:$0]  (%p774_p1), %s824_s20, 128, %s822_s30, %s376_s9  }
 0x21d PF: > { %p516_p13 = scmp.ge.s32.totalorder %s671_s16, 2  ;;  %s401_s18 = sand.u32 1, %s659_s1  }
 0x21e   : > { %s402_s21 = scalar_lea.sflag [#allocation9], %s401_s18 }
 0x21f   : > { %p513_p0 = pnand %p516_p13, %p778_p2 }
 0x221   : > { %654 = dma.done.wait (!%p513_p0), %s402_s21, 128  }
 0x222   : > { %656 = vsyncadd (!%p513_p0), %s402_s21, 4294967168  ;;  %s883_s28 = sld [smem:[#allocation16_spill]]  ;;  %p28_p3 = scmp.ge.s32.totalorder %s761_s19, 4  }
 0x223   : > { %s884_s1 = smov %s663_s14  ;;  %s885_s14 = smov %s667_s15 }
 0x224   : > { %s887_s16 = smov %s761_s19  ;;  %30 = sbr.rel (!%p28_p3) target bundleno = 28 (0x1c), region = 194 }
 0x228   : > { %s886_s15 = smov %s883_s28 }
 0x22b   :  { %407 = vsyncpa [#allocation9], 1 }
 0x22c   :  { %409 = vsyncpa [#allocation9 + $0x1], 1 }
 0x22d   :  { %410 = vsyncmov [#allocation4] }
 0x230   :  { %s411_s16 = vpop.sfrf %410 }
 0x231   :  { %p508_p1 = scmp.ne.s32.totalorder %s411_s16, 0 }
 0x233   :  { %415 = shalt.err (%p508_p1)  }
 0x234   :  { %417 = vsyncmov [#allocation4 + $0x1] }
 0x237   :  { %s418_s23 = vpop.sfrf %417 }
 0x238   :  { %p509_p2 = scmp.ne.s32.totalorder %s418_s23, 0 }
 0x23a   :  { %422 = shalt.err (%p509_p2)  }

</bundles_post_ra>
